<compile_context>
chip_gen: v7x
topology: tpu7x:2x2x1
jax: 0.10.0
libtpu: 0.0.40
codegen_flags: <defaults>
</compile_context>

<pallas_src>
import functools

import jax
import jax.numpy as jnp
from jax.experimental import pallas as pl
from jax.experimental.pallas import tpu as pltpu

_MAX_TILE_BYTES = 8 * 1024 * 1024          # upper bound per tile (per array)
_LANE_CANDIDATES = (16384, 8192, 4096, 2048, 1024, 512, 256, 128)
_DEFAULT_MIN_PALLAS_ELEMENTS = 256 * 1024  # below this, XLA fusion wins


def _laser_kernel(x_ref, o_ref, *, gain):
    # Pure VPU elementwise multiply; gain is a weak-typed Python float closure
    # constant, so float input dtypes are preserved.
    o_ref[...] = (x_ref[...] * gain).astype(o_ref.dtype)


def _vmem_budget_bytes() -> int:
    """Portable per-TC VMEM budget (leave headroom below physical capacity)."""
    try:
        cap = pltpu.get_tpu_info().vmem_capacity_bytes
    except Exception:
        cap = 64 << 20  # conservative (v7x per-TC) if the query is unavailable
    # Use at most ~3/4 of capacity and never more than 48 MiB.
    return min(48 << 20, (cap * 3) // 4)


def laser(x: jax.Array, optical_gain: float = 0.2, *,
          min_pallas_elements: int = _DEFAULT_MIN_PALLAS_ELEMENTS) -> jax.Array:
    """Elementwise optical-gain scaling: y = x * optical_gain."""
    total = x.size

    def _xla_fallback():
        # Zero-arithmetic-intensity op: for tiny / non-factorable / integer
        # inputs, letting XLA fuse the multiply is strictly faster (and keeps
        # PyTorch-like dtype promotion for integer inputs).
        return x * optical_gain

    if total == 0 or total < min_pallas_elements:
        return _xla_fallback()
    if not jnp.issubdtype(x.dtype, jnp.floating):
        return _xla_fallback()

    itemsize = jnp.dtype(x.dtype).itemsize
    # Sublane packing: 8 rows for 32-bit, 16 for bf16/f16, 32 for fp8.
    sublane_pack = max(8, 32 // max(1, itemsize))

    # Lane-dense 2D layout: last axis a multiple of 128 lanes (wide, unmasked
    # vst slabs), rows a multiple of the packed sublane count.  No padding —
    # if nothing factors, use the XLA path.
    lanes = None
    for cand in _LANE_CANDIDATES:
        if total % cand == 0 and (total // cand) % sublane_pack == 0:
            lanes = cand
            break
    if lanes is None:
        return _xla_fallback()

    rows = total // lanes
    x2d = x.reshape(rows, lanes)  # contiguous reshape: layout plumbing only

    # Tile rows so each tile is as large as the VMEM budget allows
    # (in + out, double-buffered => ~4x tile bytes resident), capped at 8 MiB.
    vmem_budget = _vmem_budget_bytes()
    tile_bytes_target = min(_MAX_TILE_BYTES, vmem_budget // 4)
    tile_rows = (tile_bytes_target // (lanes * itemsize)) // sublane_pack * sublane_pack
    tile_rows = max(sublane_pack, min(rows, tile_rows))
    grid = (pl.cdiv(rows, tile_rows),)

    tile_bytes = tile_rows * lanes * itemsize
    # Explicit scoped-VMEM limit: 2 arrays x 2 buffers x tile + headroom,
    # but never below 32 MiB or above the per-generation budget.
    vmem_limit = int(min(vmem_budget, max(32 << 20, 4 * tile_bytes + (2 << 20))))

    kernel = functools.partial(_laser_kernel, gain=float(optical_gain))

    out2d = pl.pallas_call(
        kernel,
        out_shape=jax.ShapeDtypeStruct(x2d.shape, x2d.dtype),
        grid=grid,
        in_specs=[pl.BlockSpec((tile_rows, lanes), lambda i: (i, 0))],
        out_specs=pl.BlockSpec((tile_rows, lanes), lambda i: (i, 0)),
        compiler_params=pltpu.CompilerParams(
            dimension_semantics=("parallel",),
            vmem_limit_bytes=vmem_limit,
        ),
    )(x2d)

    return out2d.reshape(x.shape)


if __name__ == "__main__":
    key = jax.random.PRNGKey(0)
    optical_gain = 0.2

    # 1) Primary small case matching the module's typical NCHW activation:
    #    batch=2, ch=4, 16x16.  Force the Pallas path (min_pallas_elements=0)
    #    so the kernel itself is exercised; layout becomes lane-dense (8, 256).
    x = jax.random.normal(key, (2, 4, 16, 16), dtype=jnp.float32)
    y = jax.block_until_ready(laser(x, optical_gain, min_pallas_elements=0))
    assert y.shape == x.shape and y.dtype == x.dtype
    assert jnp.allclose(y, x * optical_gain, atol=1e-6, rtol=1e-6)

    # 2) Larger activation that takes the Pallas path under the default size
    #    guard (256K f32 elements -> lane-dense (16, 16384), 1 MiB).
    key2 = jax.random.PRNGKey(1)
    x_big = jax.random.normal(key2, (2, 4, 256, 128), dtype=jnp.float32)
    y_big = jax.block_until_ready(laser(x_big, optical_gain))
    assert y_big.shape == x_big.shape and y_big.dtype == x_big.dtype
    assert jnp.allclose(y_big, x_big * optical_gain, atol=1e-6, rtol=1e-6)

    # 3) Awkward size: exercises the no-pad XLA fallback (no extra HBM passes).
    key3 = jax.random.PRNGKey(2)
    x_odd = jax.random.normal(key3, (3, 5, 7), dtype=jnp.float32)
    y_odd = jax.block_until_ready(laser(x_odd, optical_gain))
    assert y_odd.shape == x_odd.shape
    assert jnp.allclose(y_odd, x_odd * optical_gain, atol=1e-6, rtol=1e-6)

    print("KERNEL_OK")
</pallas_src>

<mosaic_0001>
module attributes {stable_mosaic.version = 11 : i64} {
  func.func @_laser_kernel(%arg0: i32, %arg1: memref<8x256xf32, #tpu.memory_space<vmem>>, %arg2: memref<8x256xf32, #tpu.memory_space<vmem>>) attributes {dimension_semantics = [#tpu.dimension_semantics<parallel>], iteration_bounds = array<i64: 1>, scalar_prefetch = 0 : i64, scratch_operands = 0 : i64, tpu.core_type = #tpu.core_type<tc>, window_params = [{transform_indices = @transform_0, window_bounds = array<i64: 8, 256>}, {transform_indices = @transform_1, window_bounds = array<i64: 8, 256>}]} {
    %c0 = arith.constant 0 : index
    %c0_0 = arith.constant 0 : index
    %0 = vector.load %arg1[%c0, %c0_0] : memref<8x256xf32, #tpu.memory_space<vmem>>, vector<8x256xf32>
    %cst = arith.constant 2.000000e-01 : f32
    %1 = vector.broadcast %cst : f32 to vector<8x256xf32>
    %2 = arith.mulf %0, %1 : vector<8x256xf32>
    %c0_1 = arith.constant 0 : index
    %c0_2 = arith.constant 0 : index
    %3 = vector.load %arg2[%c0_1, %c0_2] : memref<8x256xf32, #tpu.memory_space<vmem>>, vector<8x256xf32>
    tpu.vector_store %arg2[%c0_1, %c0_2], %2 {strides = array<i32>} : memref<8x256xf32, #tpu.memory_space<vmem>>, vector<8x256xf32>,
    return
  }
  func.func @transform_0(%arg0: i32) -> (i32, i32) {
    %c0_i32 = arith.constant 0 : i32
    %c0_i32_0 = arith.constant 0 : i32
    return %arg0, %c0_i32 : i32, i32
  }
  func.func @transform_1(%arg0: i32) -> (i32, i32) {
    %c0_i32 = arith.constant 0 : i32
    %c0_i32_0 = arith.constant 0 : i32
    return %arg0, %c0_i32 : i32, i32
  }
}

</mosaic_0001>

<bundles_post_ra>
// kernel: tpu_custom_call.1
= control target key start
LH: loop header
LB: loop body
LE: loop exit
PB: predicated region body
PF: predicated region fallthrough
CT: control target
= control target key end

     0   :  { %6 = vsyncpa [#allocation3], 0  ;;  %s128_s0 = inlined_call_operand.hbm [shape: f32[8,256], index: 0, kind: input, shape index: {}]   ;;  %s129_s1 = inlined_call_operand.hbm [shape: f32[8,256], index: 1, kind: output, shape index: {}]  }
   0x1   :  { %7 = vsyncpa [#allocation4], 0  ;;  %s92_s6 = smov [#allocation2]   ;;  %s44_s10 = scalar_lea.hbm %s128_s0, 256 }
   0x2   :  { %s14_s7 = sshll.u32 %s92_s6, 4  ;;  %p45_p0 = scmp.ne.s32.totalorder %s128_s0, %s44_s10  ;;  %s15_s7 = int_to_ptr.vmem [resolvable:$true] %s14_s7 }
   0x3   :  { %p48_p1 = scmp.lt.u32.totalorder %s44_s10, %s128_s0 }
   0x5   :  { %p50_p2 = pnand %p48_p1, %p45_p0 }
   0x7   :  { %53 = shalt.err (!%p50_p2)
}
   0x8   :  { %s54_s15 = scalar_lea.vmem %s15_s7, 256  ;;  %p59_p4 = scmp.lt.s32.totalorder %s15_s7, %s15_s7 }
   0x9   :  { %p55_p3 = scmp.ne.s32.totalorder %s15_s7, %s54_s15  ;;  %p60_p5 = scmp.lt.s32.totalorder %s54_s15, %s54_s15 }
   0xb   :  { %p61_p6 = por %p60_p5, %p59_p4 }
   0xd   :  { %p62_p7 = pnand %p61_p6, %p55_p3 }
   0xf   :  { %65 = shalt.err (!%p62_p7)
}
  0x10   :  { %17 = dma.hbm_to_vmem [thread:$0]  %s128_s0, 256, %s15_s7, [#allocation3]  }
  0x11   :  { %88 = dma.done.wait [#allocation3], 256  }
  0x12   :  { %89 = vsyncadd [#allocation3], 4294967040  ;;  %s93_s18 = smov [#allocation5]   ;;  %v21_v0 = vld [vmem:[#allocation2] sm:$0xff]  ;;  %v22_v1 = vld [vmem:[#allocation2 + $0x8] sm:$0xff] }
  0x13   :  { %s33_s19 = sshll.u32 %s93_s18, 4  ;;  %v23_v2 = vmul.f32 0.2, %v21_v0  ;;  %v24_v3 = vmul.f32 0.2, %v22_v1  ;;  %s34_s19 = int_to_ptr.vmem [resolvable:$true] %s33_s19 }
  0x14   :  { %s66_s20 = scalar_lea.vmem %s34_s19, 256  ;;  %p71_p9 = scmp.lt.s32.totalorder %s34_s19, %s34_s19 }
  0x15   :  { %25 = vst [vmem:[#allocation5] sm:$0xff] %v23_v2  ;;  %26 = vst [vmem:[#allocation5 + $0x8] sm:$0xff] %v24_v3  ;;  %p67_p8 = scmp.ne.s32.totalorder %s34_s19, %s66_s20  ;;  %p72_p10 = scmp.lt.s32.totalorder %s66_s20, %s66_s20 }
  0x17   :  { %p73_p11 = por %p72_p10, %p71_p9 }
  0x19   :  { %p74_p12 = pnand %p73_p11, %p67_p8 }
  0x1b   :  { %77 = shalt.err (!%p74_p12)
}
  0x1c   :  { %s78_s22 = scalar_lea.hbm %s129_s1, 256 }
  0x1d   :  { %p79_p13 = scmp.ne.s32.totalorder %s129_s1, %s78_s22  ;;  %p82_p0 = scmp.lt.u32.totalorder %s78_s22, %s129_s1 }
  0x1f   :  { %p84_p1 = pnand %p82_p0, %p79_p13 }
  0x21   :  { %87 = shalt.err (!%p84_p1)
}
  0x22   :  { %36 = dma.vmem_to_hbm [thread:$0]  %s34_s19, 256, %s129_s1, [#allocation4]  }
  0x23   :  { %90 = dma.done.wait [#allocation4], 256  }
  0x24   :  { %91 = vsyncadd [#allocation4], 4294967040 }
  0x25   :  { %40 = vsyncpa [#allocation3], 1 }
  0x26   :  { %41 = vsyncpa [#allocation4], 1 }

</bundles_post_ra>
